<compile_context>
chip_gen: v7x
topology: tpu7x:2x2x1
jax: 0.10.0
libtpu: 0.0.40
codegen_flags: <defaults>
</compile_context>

<pallas_src>
import jax
import jax.numpy as jnp
from jax.experimental import pallas as pl
from jax.experimental.pallas import tpu as pltpu


LANE = 128     # TPU lane width
MAX_TB = 2048  # batch tile cap that is scoped-VMEM-safe on v5e/v6e/v7x


def _round_up(n, m):
    return pl.cdiv(n, m) * m


def dqn_kernel(x_ref, w1_ref, b1_ref, w2_ref, b2_ref, w3_ref, b3_ref, out_ref):
    # In-kernel bf16 cast of the activations (saves a standalone XLA convert).
    x = x_ref[...].astype(jnp.bfloat16)
    # layer1: bf16 MXU matmul, f32 accumulate; bias + ReLU in f32 on the VPU.
    h1 = jnp.dot(x, w1_ref[...], preferred_element_type=jnp.float32)
    h1 = jnp.maximum(h1 + b1_ref[...], 0.0)
    # layer2
    h2 = jnp.dot(h1.astype(jnp.bfloat16), w2_ref[...],
                 preferred_element_type=jnp.float32)
    h2 = jnp.maximum(h2 + b2_ref[...], 0.0)
    # layer3 (no activation). w3/b3 are lane-padded to 128 columns; slice the
    # real action columns before the store so the HBM writeback stays narrow.
    q = jnp.dot(h2.astype(jnp.bfloat16), w3_ref[...],
                preferred_element_type=jnp.float32) + b3_ref[...]
    out_ref[...] = q[:, :out_ref.shape[1]].astype(out_ref.dtype)


def prepare_dqn_params(params):
    """One-time parameter prep (call at init / target-net sync, NOT per forward):
    bf16 weights for the MXU, f32 biases for the VPU epilogue, layer-3
    zero-padded to a lane-dense multiple of 128 output columns."""
    n_actions = params["w3"].shape[1]
    n_out_pad = _round_up(n_actions, LANE)
    w3, b3 = params["w3"], params["b3"]
    if n_out_pad != n_actions:
        w3 = jnp.pad(w3, ((0, 0), (0, n_out_pad - n_actions)))
        b3 = jnp.pad(b3, ((0, 0), (0, n_out_pad - n_actions)))
    prepared = {
        "w1": params["w1"].astype(jnp.bfloat16), "b1": params["b1"],
        "w2": params["w2"].astype(jnp.bfloat16), "b2": params["b2"],
        "w3": w3.astype(jnp.bfloat16), "b3": b3,
    }
    return prepared, n_actions


def _cost_estimate(b, n_obs, hidden, n_out_pad, n_actions):
    flops = 2 * b * (n_obs * hidden + hidden * hidden + hidden * n_out_pad)
    flops += 2 * b * hidden + b * n_out_pad  # bias adds + ReLUs (rough)
    bytes_accessed = (
        b * n_obs * 4                                                    # x (f32)
        + (n_obs * hidden + hidden * hidden + hidden * n_out_pad) * 2    # bf16 weights
        + (2 * hidden + n_out_pad) * 4                                   # f32 biases
        + b * n_actions * 4                                              # narrow f32 out
    )
    return pl.CostEstimate(flops=flops, transcendentals=0,
                           bytes_accessed=bytes_accessed)


def dqn_forward(x, prepared, n_actions, *, tile_b=512):
    """x: (B, n_obs) float32.  prepared: output of prepare_dqn_params.

    Returns (B, n_actions) float32 Q-values.
    """
    B, n_obs = x.shape
    hidden = prepared["w1"].shape[1]
    n_out_pad = prepared["w3"].shape[1]
    operands = (x, prepared["w1"], prepared["b1"], prepared["w2"],
                prepared["b2"], prepared["w3"], prepared["b3"])
    ce = _cost_estimate(B, n_obs, hidden, n_out_pad, n_actions)

    if B <= tile_b:
        # Gridless path (per-step action selection): whole problem resident in
        # VMEM, no per-step pipeline overhead, and zero pad/cast/slice kernels
        # around the call.
        vmem = pl.BlockSpec(memory_space=pltpu.MemorySpace.VMEM)
        return pl.pallas_call(
            dqn_kernel,
            out_shape=jax.ShapeDtypeStruct((B, n_actions), jnp.float32),
            in_specs=[vmem] * len(operands),
            out_specs=vmem,
            cost_estimate=ce,
        )(*operands)

    # Replay-sized batches: batch-tiled grid. tile_b=512 (sweep 512-1024)
    # amortizes the ~0.35us per-grid-step overhead; weights stay VMEM-resident
    # via constant index_maps. B > tile_b guarantees n_tiles >= 2, so the
    # "parallel" batch axis spans both v7x TensorCores.
    tb = _round_up(min(tile_b, MAX_TB), 8)
    b_pad = _round_up(B, tb)
    n_tiles = b_pad // tb
    if b_pad != B:
        x = jnp.pad(x, ((0, b_pad - B), (0, 0)))
        operands = (x,) + operands[1:]

    def const(shape):
        return pl.BlockSpec(shape, lambda i: (0, 0))

    out = pl.pallas_call(
        dqn_kernel,
        out_shape=jax.ShapeDtypeStruct((b_pad, n_actions), jnp.float32),
        grid=(n_tiles,),
        in_specs=[
            pl.BlockSpec((tb, n_obs), lambda i: (i, 0)),
            const(prepared["w1"].shape), const(prepared["b1"].shape),
            const(prepared["w2"].shape), const(prepared["b2"].shape),
            const(prepared["w3"].shape), const(prepared["b3"].shape),
        ],
        out_specs=pl.BlockSpec((tb, n_actions), lambda i: (i, 0)),
        compiler_params=pltpu.CompilerParams(
            dimension_semantics=("parallel",),
        ),
        cost_estimate=ce,
    )(*operands)
    return out[:B] if b_pad != B else out


def init_dqn_params(key, n_observations, n_actions, hidden=128):
    """Deterministic init mirroring PyTorch nn.Linear default:
    U(-1/sqrt(fan_in), 1/sqrt(fan_in)) for both weight and bias."""
    def linear(key, fan_in, fan_out):
        kw, kb = jax.random.split(key)
        bound = 1.0 / jnp.sqrt(jnp.float32(fan_in))
        w = jax.random.uniform(kw, (fan_in, fan_out), jnp.float32, -bound, bound)
        b = jax.random.uniform(kb, (1, fan_out), jnp.float32, -bound, bound)
        return w, b

    k1, k2, k3 = jax.random.split(key, 3)
    w1, b1 = linear(k1, n_observations, hidden)
    w2, b2 = linear(k2, hidden, hidden)
    w3, b3 = linear(k3, hidden, n_actions)
    return {"w1": w1, "b1": b1, "w2": w2, "b2": b2, "w3": w3, "b3": b3}


def dqn_reference_bf16(x, p):
    """Mirrors the kernel numerics: bf16 matmul inputs, f32 accumulation."""
    def mm(a, w):
        return jnp.dot(a.astype(jnp.bfloat16), w.astype(jnp.bfloat16),
                       preferred_element_type=jnp.float32)
    h1 = jax.nn.relu(mm(x, p["w1"]) + p["b1"])
    h2 = jax.nn.relu(mm(h1, p["w2"]) + p["b2"])
    return mm(h2, p["w3"]) + p["b3"]


def dqn_reference_f32(x, p):
    """True f32 reference (matches the PyTorch module's numerics)."""
    h1 = jax.nn.relu(x @ p["w1"] + p["b1"])
    h2 = jax.nn.relu(h1 @ p["w2"] + p["b2"])
    return h2 @ p["w3"] + p["b3"]


if __name__ == "__main__":
    key = jax.random.PRNGKey(0)
    k_params, k_x1, k_x2 = jax.random.split(key, 3)

    # LunarLander-ish shapes: 8 observations, 4 actions.
    n_observations, n_actions, hidden = 8, 4, 128
    params = init_dqn_params(k_params, n_observations, n_actions, hidden=hidden)
    prepared, n_act = prepare_dqn_params(params)   # hoisted out of the hot path

    # 1) Tiny inference batch -> gridless, all-VMEM path.
    x_small = jax.random.normal(k_x1, (2, n_observations), jnp.float32)
    out_small = jax.block_until_ready(dqn_forward(x_small, prepared, n_act))
    assert out_small.shape == (2, n_actions), out_small.shape
    assert jnp.allclose(out_small, dqn_reference_bf16(x_small, params),
                        atol=1e-3, rtol=1e-3), "small-batch mismatch vs bf16 ref"
    assert jnp.allclose(out_small, dqn_reference_f32(x_small, params),
                        atol=3e-2, rtol=3e-2), "small-batch mismatch vs f32 ref"

    # 2) Replay-style batch -> batch-tiled grid path (tb=512, 2 tiles, parallel axis).
    x_big = jax.random.normal(k_x2, (1024, n_observations), jnp.float32)
    out_big = jax.block_until_ready(dqn_forward(x_big, prepared, n_act))
    assert out_big.shape == (1024, n_actions), out_big.shape
    assert jnp.allclose(out_big, dqn_reference_bf16(x_big, params),
                        atol=1e-3, rtol=1e-3), "big-batch mismatch vs bf16 ref"
    assert jnp.allclose(out_big, dqn_reference_f32(x_big, params),
                        atol=3e-2, rtol=3e-2), "big-batch mismatch vs f32 ref"

    # 3) Non-multiple batch -> exercises the row-padding branch of the grid path.
    x_odd = jax.random.normal(k_x1, (600, n_observations), jnp.float32)
    out_odd = jax.block_until_ready(dqn_forward(x_odd, prepared, n_act))
    assert out_odd.shape == (600, n_actions), out_odd.shape
    assert jnp.allclose(out_odd, dqn_reference_bf16(x_odd, params),
                        atol=1e-3, rtol=1e-3), "odd-batch mismatch vs bf16 ref"

    print("KERNEL_OK")
</pallas_src>

<mosaic_0001>
module attributes {stable_mosaic.version = 11 : i64} {
  func.func @dqn_kernel(%arg0: memref<2x8xf32, #tpu.memory_space<vmem>>, %arg1: memref<8x128xbf16, #tpu.memory_space<vmem>>, %arg2: memref<1x128xf32, #tpu.memory_space<vmem>>, %arg3: memref<128x128xbf16, #tpu.memory_space<vmem>>, %arg4: memref<1x128xf32, #tpu.memory_space<vmem>>, %arg5: memref<128x128xbf16, #tpu.memory_space<vmem>>, %arg6: memref<1x128xf32, #tpu.memory_space<vmem>>, %arg7: memref<2x4xf32, #tpu.memory_space<vmem>>) attributes {dimension_semantics = [], scalar_prefetch = 0 : i64, scratch_operands = 0 : i64, tpu.core_type = #tpu.core_type<tc>} {
    %c0 = arith.constant 0 : index
    %c0_0 = arith.constant 0 : index
    %0 = vector.load %arg0[%c0, %c0_0] : memref<2x8xf32, #tpu.memory_space<vmem>>, vector<2x8xf32>
    %1 = arith.truncf %0 : vector<2x8xf32> to vector<2x8xbf16>
    %c0_1 = arith.constant 0 : index
    %c0_2 = arith.constant 0 : index
    %2 = vector.load %arg1[%c0_1, %c0_2] : memref<8x128xbf16, #tpu.memory_space<vmem>>, vector<8x128xbf16>
    %cst = arith.constant dense<0.000000e+00> : vector<2x128xf32>
    %3 = tpu.matmul %1, %2, %cst {dimension_numbers = #tpu.dot_dimension_numbers<[1], [0], [0], [1], [0, 0, 1, 1], [], []>} : vector<2x8xbf16>, vector<8x128xbf16>, vector<2x128xf32> -> vector<2x128xf32>
    %c0_3 = arith.constant 0 : index
    %c0_4 = arith.constant 0 : index
    %4 = vector.load %arg2[%c0_3, %c0_4] : memref<1x128xf32, #tpu.memory_space<vmem>>, vector<1x128xf32>
    %5 = vector.broadcast %4 : vector<1x128xf32> to vector<2x128xf32>
    %6 = arith.addf %3, %5 : vector<2x128xf32>
    %cst_5 = arith.constant 0.000000e+00 : f32
    %7 = vector.broadcast %cst_5 : f32 to vector<2x128xf32>
    %8 = arith.maximumf %6, %7 : vector<2x128xf32>
    %9 = arith.truncf %8 : vector<2x128xf32> to vector<2x128xbf16>
    %c0_6 = arith.constant 0 : index
    %c0_7 = arith.constant 0 : index
    %10 = vector.load %arg3[%c0_6, %c0_7] : memref<128x128xbf16, #tpu.memory_space<vmem>>, vector<128x128xbf16>
    %cst_8 = arith.constant dense<0.000000e+00> : vector<2x128xf32>
    %11 = tpu.matmul %9, %10, %cst_8 {dimension_numbers = #tpu.dot_dimension_numbers<[1], [0], [0], [1], [0, 0, 1, 1], [], []>} : vector<2x128xbf16>, vector<128x128xbf16>, vector<2x128xf32> -> vector<2x128xf32>
    %c0_9 = arith.constant 0 : index
    %c0_10 = arith.constant 0 : index
    %12 = vector.load %arg4[%c0_9, %c0_10] : memref<1x128xf32, #tpu.memory_space<vmem>>, vector<1x128xf32>
    %13 = vector.broadcast %12 : vector<1x128xf32> to vector<2x128xf32>
    %14 = arith.addf %11, %13 : vector<2x128xf32>
    %cst_11 = arith.constant 0.000000e+00 : f32
    %15 = vector.broadcast %cst_11 : f32 to vector<2x128xf32>
    %16 = arith.maximumf %14, %15 : vector<2x128xf32>
    %17 = arith.truncf %16 : vector<2x128xf32> to vector<2x128xbf16>
    %c0_12 = arith.constant 0 : index
    %c0_13 = arith.constant 0 : index
    %18 = vector.load %arg5[%c0_12, %c0_13] : memref<128x128xbf16, #tpu.memory_space<vmem>>, vector<128x128xbf16>
    %cst_14 = arith.constant dense<0.000000e+00> : vector<2x128xf32>
    %19 = tpu.matmul %17, %18, %cst_14 {dimension_numbers = #tpu.dot_dimension_numbers<[1], [0], [0], [1], [0, 0, 1, 1], [], []>} : vector<2x128xbf16>, vector<128x128xbf16>, vector<2x128xf32> -> vector<2x128xf32>
    %c0_15 = arith.constant 0 : index
    %c0_16 = arith.constant 0 : index
    %20 = vector.load %arg6[%c0_15, %c0_16] : memref<1x128xf32, #tpu.memory_space<vmem>>, vector<1x128xf32>
    %21 = vector.broadcast %20 : vector<1x128xf32> to vector<2x128xf32>
    %22 = arith.addf %19, %21 : vector<2x128xf32>
    %23 = vector.extract_strided_slice %22 {offsets = [0, 0], sizes = [2, 4], strides = [1, 1]} : vector<2x128xf32> to vector<2x4xf32>
    %c0_17 = arith.constant 0 : index
    %c0_18 = arith.constant 0 : index
    %24 = vector.load %arg7[%c0_17, %c0_18] : memref<2x4xf32, #tpu.memory_space<vmem>>, vector<2x4xf32>
    tpu.vector_store %arg7[%c0_17, %c0_18], %23 {strides = array<i32>} : memref<2x4xf32, #tpu.memory_space<vmem>>, vector<2x4xf32>,
    return
  }
}

</mosaic_0001>

<bundles_post_ra>
// kernel: tpu_custom_call.1
= control target key start
LH: loop header
LB: loop body
LE: loop exit
PB: predicated region body
PF: predicated region fallthrough
CT: control target
= control target key end

     0   :  { %12 = vsyncpa [#allocation3], 0  ;;  %s752_s0 = inlined_call_operand.hbm [shape: f32[2,8], index: 0, kind: input, shape index: {}]   ;;  %s753_s1 = inlined_call_operand.hbm [shape: bf16[8,128], index: 1, kind: input, shape index: {}]   ;;  %s754_s2 = inlined_call_operand.vmem [shape: f32[1,128], index: 2, kind: input, shape index: {}]   ;;  %s755_s3 = inlined_call_operand.hbm [shape: bf16[128,128], index: 3, kind: input, shape index: {}]   ;;  %s756_s4 = inlined_call_operand.vmem [shape: f32[1,128], index: 4, kind: input, shape index: {}]   ;;  %s757_s5 = inlined_call_operand.hbm [shape: bf16[128,128], index: 5, kind: input, shape index: {}]   ;;  %s758_s6 = inlined_call_operand.vmem [shape: f32[1,128], index: 6, kind: input, shape index: {}]   ;;  %s759_s7 = inlined_call_operand.hbm [shape: f32[2,4], index: 7, kind: output, shape index: {}]  }
   0x1   :  { %13 = vsyncpa [#allocation6], 0 }
   0x2   :  { %14 = vsyncpa [#allocation9], 0 }
   0x3   :  { %15 = vsyncpa [#allocation4], 0  ;;  %s611_s24 = smov [#allocation5]   ;;  %s612_s26 = smov [#allocation2]  }
   0x4   :  { %s32_s25 = sshll.u32 %s611_s24, 4  ;;  %s22_s27 = sshll.u32 %s612_s26, 4  ;;  %s33_s25 = int_to_ptr.vmem [resolvable:$true] %s32_s25  ;;  %s23_s27 = int_to_ptr.vmem [resolvable:$true] %s22_s27 }
   0x5   :  { %s493_s30 = scalar_lea.hbm %s753_s1, 64 }
   0x6   :  { %p494_p0 = scmp.ne.s32.totalorder %s753_s1, %s493_s30  ;;  %p497_p1 = scmp.lt.u32.totalorder %s493_s30, %s753_s1 }
   0x8   :  { %p499_p2 = pnand %p497_p1, %p494_p0 }
   0xa   :  { %502 = shalt.err (!%p499_p2)
}
   0xb   :  { %s503_s12 = scalar_lea.vmem %s33_s25, 64  ;;  %p508_p4 = scmp.lt.s32.totalorder %s33_s25, %s33_s25 }
   0xc   :  { %p504_p3 = scmp.ne.s32.totalorder %s33_s25, %s503_s12  ;;  %p509_p5 = scmp.lt.s32.totalorder %s503_s12, %s503_s12 }
   0xe   :  { %p510_p6 = por %p509_p5, %p508_p4 }
  0x10   :  { %p511_p7 = pnand %p510_p6, %p504_p3 }
  0x12   :  { %514 = shalt.err (!%p511_p7)
}
  0x13   :  { %35 = dma.hbm_to_vmem [thread:$0]  %s753_s1, 64, %s33_s25, [#allocation6]  }
  0x14   :  { %s515_s17 = scalar_lea.hbm %s752_s0, 32 }
  0x15   :  { %p516_p8 = scmp.ne.s32.totalorder %s752_s0, %s515_s17  ;;  %p519_p9 = scmp.lt.u32.totalorder %s515_s17, %s752_s0 }
  0x17   :  { %p521_p10 = pnand %p519_p9, %p516_p8 }
  0x19   :  { %524 = shalt.err (!%p521_p10)
}
  0x1a   :  { %s525_s22 = scalar_lea.vmem %s23_s27, 32  ;;  %p530_p12 = scmp.lt.s32.totalorder %s23_s27, %s23_s27 }
  0x1b   :  { %p526_p11 = scmp.ne.s32.totalorder %s23_s27, %s525_s22  ;;  %p531_p13 = scmp.lt.s32.totalorder %s525_s22, %s525_s22 }
  0x1d   :  { %p532_p0 = por %p531_p13, %p530_p12 }
  0x1f   :  { %p533_p1 = pnand %p532_p0, %p526_p11 }
  0x21   :  { %536 = shalt.err (!%p533_p1)
}
  0x22   :  { %25 = dma.hbm_to_vmem [thread:$0]  %s752_s0, 32, %s23_s27, [#allocation3]  }
  0x23   :  { %s613_s24 = smov [#allocation7]   ;;  %s537_s29 = scalar_lea.hbm %s755_s3, 1024 }
  0x24   :  { %s43_s25 = sshll.u32 %s613_s24, 4  ;;  %p538_p2 = scmp.ne.s32.totalorder %s755_s3, %s537_s29  ;;  %s44_s25 = int_to_ptr.vmem [resolvable:$true] %s43_s25 }
  0x25   :  { %p541_p3 = scmp.lt.u32.totalorder %s537_s29, %s755_s3 }
  0x27   :  { %p543_p4 = pnand %p541_p3, %p538_p2 }
  0x29   :  { %546 = shalt.err (!%p543_p4)
}
  0x2a   :  { %s547_s11 = scalar_lea.vmem %s44_s25, 1024  ;;  %p552_p6 = scmp.lt.s32.totalorder %s44_s25, %s44_s25 }
  0x2b   :  { %p548_p5 = scmp.ne.s32.totalorder %s44_s25, %s547_s11  ;;  %p553_p7 = scmp.lt.s32.totalorder %s547_s11, %s547_s11 }
  0x2d   :  { %p554_p8 = por %p553_p7, %p552_p6 }
  0x2f   :  { %p555_p9 = pnand %p554_p8, %p548_p5 }
  0x31   :  { %558 = shalt.err (!%p555_p9)
}
  0x32   :  { %s614_s0 = smov 64   ;;  %s615_s27 = smov 4  }
  0x33   :  { %49 = dma.hbm_to_vmem [thread:$0]  %s755_s3, 1024, %s44_s25, [#allocation6], %s614_s0, %s614_s0, %s615_s27  }
  0x34   :  { %s616_s14 = smov [#allocation8]   ;;  %s559_s18 = scalar_lea.hbm %s757_s5, 1024 }
  0x35   :  { %s57_s15 = sshll.u32 %s616_s14, 4  ;;  %p560_p10 = scmp.ne.s32.totalorder %s757_s5, %s559_s18  ;;  %s58_s15 = int_to_ptr.vmem [resolvable:$true] %s57_s15 }
  0x36   :  { %p563_p11 = scmp.lt.u32.totalorder %s559_s18, %s757_s5 }
  0x38   :  { %p565_p12 = pnand %p563_p11, %p560_p10 }
  0x3a   :  { %568 = shalt.err (!%p565_p12)
}
  0x3b   :  { %s569_s1 = scalar_lea.vmem %s58_s15, 1024  ;;  %p574_p0 = scmp.lt.s32.totalorder %s58_s15, %s58_s15 }
  0x3c   :  { %p570_p13 = scmp.ne.s32.totalorder %s58_s15, %s569_s1  ;;  %p575_p1 = scmp.lt.s32.totalorder %s569_s1, %s569_s1 }
  0x3e   :  { %p576_p2 = por %p575_p1, %p574_p0 }
  0x40   :  { %p577_p3 = pnand %p576_p2, %p570_p13 }
  0x42   :  { %580 = shalt.err (!%p577_p3)
}
  0x43   :  { %63 = dma.hbm_to_vmem [thread:$0]  %s757_s5, 1024, %s58_s15, [#allocation9], %s614_s0, %s614_s0, %s615_s27  }
  0x44   :  { %603 = dma.done.wait [#allocation3], 32  }
  0x45   :  { %604 = vsyncadd [#allocation3], 4294967264 }
  0x46   :  { %605 = dma.done.wait [#allocation6], 1088  }
  0x47   :  { %606 = vsyncadd [#allocation6], 4294966208 }
  0x48   :  { %607 = dma.done.wait [#allocation9], 1024  }
  0x49   :  { %608 = vsyncadd [#allocation9], 4294966272  ;;  %v617_v0 = vmov 0.0   ;;  %vm618_vm0 = vmmov 0   ;;  %vm93_vm1 = vcmask 1043456   ;;  %v477_v5 = vld [vmem:[#allocation7] sm:$0xff]  }
  0x4a   :  { %422 = vmatprep.subr.bf16.mxu0 %v617_v0  ;;  %424 = vmatprep.mubr.msk.bf16.mxu0 %vm618_vm0, %v617_v0  ;;  %v81_v1 = vld [vmem:[#allocation5] sm:$0xf]  ;;  %v79_v2 = vld [vmem:[#allocation2] sm:$0x3]  ;;  %vm89_vm2 = vcmask 64512   ;;  %v478_v6 = vld [vmem:[#allocation7 + $0x8] sm:$0xff]  }
  0x4b   :  { %428 = vmatprep.subr.bf16.mxu1 %v617_v0  ;;  %444 = vmatprep.mubr.msk.bf16.mxu1 %vm618_vm0, %v617_v0  ;;  %v95_v3 = vsel %vm93_vm1, %v81_v1, 0  ;;  %v80_v4 = vpack.c.bf16 %v79_v2, %v79_v2  ;;  %v479_v7 = vld [vmem:[#allocation7 + $0x10] sm:$0xff]   ;;  %v480_v8 = vld [vmem:[#allocation7 + $0x18] sm:$0xff]   ;;  %v481_v9 = vld [vmem:[#allocation7 + $0x20] sm:$0xff]   ;;  %s619_s29 = smov [#allocation10]   ;;  %vm363_vm3 = vcmask 25600  }
  0x4c   :  { %423 = vmatpush3.bf16.msra.mxu0 %v95_v3  ;;  %429 = vmatpush3.bf16.msra.mxu1 %v477_v5  ;;  %v482_v10 = vld [vmem:[#allocation7 + $0x28] sm:$0xff]   ;;  %v483_v11 = vld [vmem:[#allocation7 + $0x30] sm:$0xff]   ;;  %v484_v12 = vld [vmem:[#allocation7 + $0x38] sm:$0xff]   ;;  %s371_s30 = sshll.u32 %s619_s29, 4  ;;  %s372_s30 = int_to_ptr.vmem [resolvable:$true] %s371_s30 }
  0x4d   :  { %448 = vmatprep.subr.bf16.mxu0 %v617_v0  ;;  %430 = vmatprep.subr.bf16.mxu1 %v617_v0  ;;  %v485_v13 = vld [vmem:[#allocation8] sm:$0xff]   ;;  %v486_v14 = vld [vmem:[#allocation8 + $0x8] sm:$0xff]   ;;  %v487_v15 = vld [vmem:[#allocation8 + $0x10] sm:$0xff]   ;;  %p586_p5 = scmp.lt.s32.totalorder %s372_s30, %s372_s30 }
  0x4e   :  { %v488_v16 = vld [vmem:[#allocation8 + $0x18] sm:$0xff]   ;;  %v489_v17 = vld [vmem:[#allocation8 + $0x20] sm:$0xff]   ;;  %v490_v18 = vld [vmem:[#allocation8 + $0x28] sm:$0xff]  }
  0x4f   :  { %425 = vmatmul.mubr.msk.bf16.vlgmr.msra.gmra.mrb[0].mxu0 %vm89_vm2, %v80_v4  ;;  %v382_v19 = vld [vmem:[%s754_s2] ss:$0 sm:$0xff]  ;;  %v491_v27 = vld [vmem:[#allocation8 + $0x30] sm:$0xff]  }
  0x50   :  { %464 = vmatprep.mubr.msk.bf16.mxu0 %vm618_vm0, %v617_v0  ;;  %431 = vmatpush3.bf16.msra.mxu1 %v478_v6  ;;  %v492_v28 = vld [vmem:[#allocation8 + $0x38] sm:$0xff]  }
  0x51   :  { %432 = vmatprep.subr.bf16.mxu1 %v617_v0  ;;  %449 = vmatpush3.bf16.msra.mxu0 %v485_v13  ;;  %v384_v29 = vld [vmem:[%s756_s4] ss:$0 sm:$0xff]  ;;  %s581_s4 = scalar_lea.vmem %s372_s30, 32 }
  0x52   :  { %450 = vmatprep.subr.bf16.mxu0 %v617_v0  ;;  %v393_v37 = vld [vmem:[%s758_s6] ss:$0 sm:$0xff]  ;;  %p582_p4 = scmp.ne.s32.totalorder %s372_s30, %s581_s4  ;;  %p587_p6 = scmp.lt.s32.totalorder %s581_s4, %s581_s4 }
  0x54   :  { %433 = vmatpush3.bf16.msra.mxu1 %v479_v7  ;;  %p588_p7 = por %p587_p6, %p586_p5 }
  0x55   :  { %434 = vmatprep.subr.bf16.mxu1 %v617_v0  ;;  %451 = vmatpush3.bf16.msra.mxu0 %v486_v14 }
  0x56   :  { %452 = vmatprep.subr.bf16.mxu0 %v617_v0  ;;  %p589_p8 = pnand %p588_p7, %p582_p4 }
  0x58   :  { %435 = vmatpush3.bf16.msra.mxu1 %v480_v8 }
  0x59   :  { %436 = vmatprep.subr.bf16.mxu1 %v617_v0  ;;  %453 = vmatpush3.bf16.msra.mxu0 %v487_v15 }
  0x5a   :  { %454 = vmatprep.subr.bf16.mxu0 %v617_v0 }
  0x5c   :  { %437 = vmatpush3.bf16.msra.mxu1 %v481_v9 }
  0x5d   :  { %438 = vmatprep.subr.bf16.mxu1 %v617_v0  ;;  %455 = vmatpush3.bf16.msra.mxu0 %v488_v16 }
  0x5e   :  { %456 = vmatprep.subr.bf16.mxu0 %v617_v0 }
  0x60   :  { %439 = vmatpush3.bf16.msra.mxu1 %v482_v10 }
  0x61   :  { %440 = vmatprep.subr.bf16.mxu1 %v617_v0  ;;  %457 = vmatpush3.bf16.msra.mxu0 %v489_v17 }
  0x62   :  { %458 = vmatprep.subr.bf16.mxu0 %v617_v0 }
  0x64   :  { %441 = vmatpush3.bf16.msra.mxu1 %v483_v11 }
  0x65   :  { %442 = vmatprep.subr.bf16.mxu1 %v617_v0  ;;  %459 = vmatpush3.bf16.msra.mxu0 %v490_v18 }
  0x66   :  { %460 = vmatprep.subr.bf16.mxu0 %v617_v0 }
  0x68   :  { %443 = vmatpush3.bf16.msra.mxu1 %v484_v12 }
  0x69   :  { %461 = vmatpush3.bf16.msra.mxu0 %v491_v27 }
  0x6a   :  { %462 = vmatprep.subr.bf16.mxu0 %v617_v0 }
  0x6d   :  { %463 = vmatpush3.bf16.msra.mxu0 %v492_v28 }
 0x122   :  { %v131_v20 = vpop.f32.mrb[0].mxu0 }
 0x123   :  { %v132_v21 = vadd.f32 %v382_v19, %v131_v20  ;;  %v426_v22 = vpop.f32.mrb[1].mxu0 }
 0x124   :  { %v134_v23 = vpop.f32.mrb[2].mxu0 }
 0x125   :  { %v137_v24 = vmax.f32 %v132_v21, 0.0  ;;  %v427_v25 = vpop.f32.mrb[3].mxu0 }
 0x127   :  { %v138_v26 = vpack.c.bf16 %v137_v24, %v137_v24 }
 0x129   :  { %445 = vmatmul.mubr.bf16.vlgmr.msra.gmra.mrb[0].mxu1 %v138_v26 }
 0x1fc   :  { %v244_v30 = vpop.f32.mrb[0].mxu1 }
 0x1fd   :  { %v245_v31 = vadd.f32 %v384_v29, %v244_v30  ;;  %v446_v32 = vpop.f32.mrb[1].mxu1 }
 0x1fe   :  { %v247_v33 = vpop.f32.mrb[2].mxu1 }
 0x1ff   :  { %v250_v34 = vmax.f32 %v245_v31, 0.0  ;;  %v447_v35 = vpop.f32.mrb[3].mxu1 }
 0x201   :  { %v251_v36 = vpack.c.bf16 %v250_v34, %v250_v34 }
 0x203   :  { %465 = vmatmul.mubr.bf16.vlgmr.msra.gmra.mrb[4].mxu0 %v251_v36 }
 0x2d6   :  { %v357_v38 = vpop.f32.mrb[4].mxu0 }
 0x2d7   :  { %v358_v39 = vadd.f32 %v393_v37, %v357_v38  ;;  %v466_v40 = vpop.f32.mrb[5].mxu0 }
 0x2d8   :  { %v360_v41 = vpop.f32.mrb[6].mxu0 }
 0x2d9   :  { %v467_v42 = vpop.f32.mrb[7].mxu0  ;;  %364 = vst.msk [vmem:[#allocation10] sm:$0x3] %vm363_vm3, %v358_v39 }
 0x2da   :  { %592 = shalt.err (!%p589_p8)
}
 0x2db   :  { %s593_s6 = scalar_lea.hbm %s759_s7, 32 }
 0x2dc   :  { %p594_p9 = scmp.ne.s32.totalorder %s759_s7, %s593_s6  ;;  %p597_p10 = scmp.lt.u32.totalorder %s593_s6, %s759_s7 }
 0x2de   :  { %p599_p11 = pnand %p597_p10, %p594_p9 }
 0x2e0   :  { %602 = shalt.err (!%p599_p11)
}
 0x2e1   :  { %374 = dma.vmem_to_hbm [thread:$0]  %s372_s30, 32, %s759_s7, [#allocation4]  }
 0x2e2   :  { %609 = dma.done.wait [#allocation4], 32  }
 0x2e3   :  { %610 = vsyncadd [#allocation4], 4294967264 }
 0x2e4   :  { %378 = vsyncpa [#allocation3], 1 }
 0x2e5   :  { %379 = vsyncpa [#allocation6], 1 }
 0x2e6   :  { %380 = vsyncpa [#allocation9], 1 }
 0x2e7   :  { %381 = vsyncpa [#allocation4], 1 }

</bundles_post_ra>
